<compile_context>
chip_gen: v7x
topology: tpu7x:2x2x1
jax: 0.10.0
libtpu: 0.0.40
codegen_flags: <defaults>
</compile_context>

<pallas_src>
import jax
import jax.numpy as jnp
from jax.experimental import pallas as pl
from jax.experimental.pallas import tpu as pltpu


def _round_up(x: int, m: int) -> int:
    return (x + m - 1) // m * m


def _tpu_vmem_capacity_bytes() -> int:
    """Per-TensorCore VMEM capacity; conservative (v7x) fallback."""
    try:
        info = pltpu.get_tpu_info()
        cap = getattr(info, "vmem_capacity_bytes", None)
        if cap:
            return int(cap)
    except Exception:
        pass
    return 64 << 20


# --------------------------------------------------------------------------
# Kernels
# --------------------------------------------------------------------------
def _resident_kernel(x_ref, w_ref, b_ref, o_ref, act_ref):
    """All-layer weights resident in VMEM.

    x_ref: (tm, Dp); w_ref: (L, Dp, Dp); b_ref: (L, Dp); o_ref: (tm, Dp);
    act_ref: (tm, Dp) f32 scratch for the inter-layer activation.
    """
    num_layers = w_ref.shape[0]
    wd = w_ref.dtype

    lhs = x_ref[...]
    if lhs.dtype != wd:
        lhs = lhs.astype(wd)

    # num_layers is small & static -> unrolled.
    # TODO(synk): for very large num_layers, switch to lax.fori_loop indexing
    # w_ref[l] / b_ref[l] to keep codegen size flat.
    for l in range(num_layers):
        acc = jnp.dot(lhs, w_ref[l], preferred_element_type=jnp.float32)
        h = jnp.maximum(acc + b_ref[l].astype(jnp.float32), 0.0)
        if l + 1 < num_layers:
            # Bound the live range of the f32 activation via explicit scratch.
            act_ref[...] = h
            lhs = act_ref[...]
            if wd != jnp.float32:
                lhs = lhs.astype(wd)
        else:
            o_ref[...] = h.astype(o_ref.dtype)


def _streaming_kernel(x_ref, w_hbm, b_ref, o_ref, w_buf, sem, act_ref):
    """Per-layer weight streaming (weights stay in HBM, 2-deep VMEM buffer).

    x_ref: (tm, Dp); w_hbm: (L, Dp, Dp) in HBM (memory_space=pl.ANY);
    b_ref: (L, Dp); o_ref: (tm, Dp);
    w_buf: (2, Dp, Dp) VMEM scratch; sem: DMA sems (2,); act_ref: (tm, Dp) f32.
    """
    num_layers = b_ref.shape[0]
    wd = w_buf.dtype

    # Prefetch layer 0 weights.
    pltpu.make_async_copy(w_hbm.at[0], w_buf.at[0], sem.at[0]).start()

    lhs = x_ref[...]
    if lhs.dtype != wd:
        lhs = lhs.astype(wd)

    for l in range(num_layers):  # static, unrolled
        slot = l & 1
        pltpu.make_async_copy(w_hbm.at[l], w_buf.at[slot], sem.at[slot]).wait()
        if l + 1 < num_layers:
            # Prefetch next layer's weights under this layer's matmul.
            pltpu.make_async_copy(
                w_hbm.at[l + 1], w_buf.at[1 - slot], sem.at[1 - slot]).start()
        acc = jnp.dot(lhs, w_buf[slot], preferred_element_type=jnp.float32)
        h = jnp.maximum(acc + b_ref[l].astype(jnp.float32), 0.0)
        if l + 1 < num_layers:
            act_ref[...] = h
            lhs = act_ref[...]
            if wd != jnp.float32:
                lhs = lhs.astype(wd)
        else:
            o_ref[...] = h.astype(o_ref.dtype)


# --------------------------------------------------------------------------
# Wrapper
# --------------------------------------------------------------------------
def energy_projection(seqs, weights, biases, *, tile_m=None, force_stream=False):
    """seqs: (B, S, D).  weights: (L, Dw, Dw) pre-transposed (in, out) -- ideally
    already padded to a multiple of 128 via prepare_params.  biases: (L, Dw)."""
    B, S, D = seqs.shape
    L, Dw_in, Dw = weights.shape
    assert Dw_in == Dw, "weights must be square (in, out) stacks"
    assert L >= 1, "num_layers must be >= 1"
    M = B * S
    out_dtype = seqs.dtype
    w_dtype = weights.dtype

    # ---- lane-dense model dim (prefer pre-padded params) --------------------
    if Dw >= D and Dw % 128 == 0:
        Dp = Dw                              # padding hoisted to prepare_params
    else:
        Dp = _round_up(D, 128)
        if Dw != Dp:                         # per-call fallback pad (avoid!)
            pad = Dp - Dw
            weights = jnp.pad(weights, ((0, 0), (0, pad), (0, pad)))
            biases = jnp.pad(biases, ((0, 0), (0, pad)))

    # x tiles in the (narrower) weight dtype -> halved input DMA / VMEM on bf16.
    x_dtype = (w_dtype
               if jnp.dtype(w_dtype).itemsize < jnp.dtype(out_dtype).itemsize
               else out_dtype)
    x2d = seqs.reshape(M, D)
    if x2d.dtype != x_dtype:
        x2d = x2d.astype(x_dtype)            # fused with the pad below by XLA
    if Dp != D:
        x2d = jnp.pad(x2d, ((0, 0), (0, Dp - D)))

    # ---- hardware / generation awareness ------------------------------------
    vmem_cap = _tpu_vmem_capacity_bytes()
    vmem_budget = int(0.85 * vmem_cap)           # headroom for internal scratch
    multi_core = vmem_cap <= (64 << 20)          # heuristic: v7x (2 TCs / 64 MiB)

    # ---- sublane-legal M tile ------------------------------------------------
    x_item = jnp.dtype(x_dtype).itemsize
    o_item = jnp.dtype(out_dtype).itemsize
    sublane = max(32 // x_item, 32 // o_item, 8)
    if tile_m is None:
        tile_m = 256 if multi_core else 512
    tm = _round_up(min(tile_m, _round_up(M, sublane)), sublane)
    if multi_core:
        # Two TensorCores: aim for >= 4 grid steps (>= 2 per core) so the
        # BlockSpec double-buffering still hides the x/out DMAs.
        min_steps = 4
        if _round_up(M, tm) // tm < min_steps and M > min_steps * sublane:
            tm = _round_up(pl.cdiv(M, min_steps), sublane)
    Mp = _round_up(M, tm)
    if Mp != M:
        x2d = jnp.pad(x2d, ((0, Mp - M), (0, 0)))

    # ---- honest VMEM budget + path choice ------------------------------------
    w_item = jnp.dtype(w_dtype).itemsize
    b_item = jnp.dtype(biases.dtype).itemsize
    w_bytes_resident = L * Dp * Dp * w_item          # single-buffered resident
    w_bytes_stream = 2 * Dp * Dp * w_item            # 2-deep streaming buffer
    b_bytes = L * Dp * b_item
    io_bytes = 2 * tm * Dp * (x_item + o_item)       # double-buffered in + out
    act_bytes = tm * Dp * 4                          # f32 activation scratch
    headroom = 4 << 20

    resident_need = w_bytes_resident + b_bytes + io_bytes + act_bytes + headroom
    stream_need = w_bytes_stream + b_bytes + io_bytes + act_bytes + headroom
    use_stream = force_stream or resident_need > vmem_budget
    need = stream_need if use_stream else resident_need
    # TODO(synk): if even the streaming path (2*Dp^2 weights) exceeds the VMEM
    # budget, additionally tile the per-layer output-column dimension.
    vmem_limit = int(min(max(need, 32 << 20), vmem_budget))

    grid = (Mp // tm,)
    n_steps = grid[0]
    cost = pl.CostEstimate(
        flops=2 * Mp * Dp * Dp * L,
        transcendentals=0,
        bytes_accessed=(Mp * Dp * (x_item + o_item)
                        + (n_steps if use_stream else 1) * L * Dp * Dp * w_item
                        + L * Dp * b_item),
    )

    if use_stream:
        kernel = _streaming_kernel
        in_specs = [
            pl.BlockSpec((tm, Dp), lambda i: (i, 0)),                   # x tile
            pl.BlockSpec(memory_space=pl.ANY),                          # weights (HBM)
            pl.BlockSpec((L, Dp), lambda i: (0, 0),
                         pipeline_mode=pl.Buffered(1)),                 # biases
        ]
        scratch = [
            pltpu.VMEM((2, Dp, Dp), w_dtype),        # double-buffered layer weights
            pltpu.SemaphoreType.DMA((2,)),
            pltpu.VMEM((tm, Dp), jnp.float32),       # inter-layer activation
        ]
    else:
        kernel = _resident_kernel
        in_specs = [
            pl.BlockSpec((tm, Dp), lambda i: (i, 0)),                   # x tile
            # Constant block index across the grid -> single-buffered residents.
            pl.BlockSpec((L, Dp, Dp), lambda i: (0, 0, 0),
                         pipeline_mode=pl.Buffered(1)),                 # weights
            pl.BlockSpec((L, Dp), lambda i: (0, 0),
                         pipeline_mode=pl.Buffered(1)),                 # biases
        ]
        scratch = [pltpu.VMEM((tm, Dp), jnp.float32)]                   # activation

    out2d = pl.pallas_call(
        kernel,
        out_shape=jax.ShapeDtypeStruct((Mp, Dp), out_dtype),
        grid_spec=pltpu.PrefetchScalarGridSpec(
            num_scalar_prefetch=0,
            grid=grid,
            in_specs=in_specs,
            out_specs=pl.BlockSpec((tm, Dp), lambda i: (i, 0)),
            scratch_shapes=scratch,
        ),
        compiler_params=pltpu.CompilerParams(
            dimension_semantics=("parallel",),
            vmem_limit_bytes=vmem_limit,
        ),
        cost_estimate=cost,
    )(x2d, weights, biases)

    return out2d[:M, :D].reshape(B, S, D)


# --------------------------------------------------------------------------
# Params + reference
# --------------------------------------------------------------------------
def init_params(key, model_dim, num_layers, dtype=jnp.float32):
    """nn.Linear-style init. Weights in PyTorch (out, in) layout."""
    bound = 1.0 / (model_dim ** 0.5)
    ws, bs = [], []
    for _ in range(num_layers):
        key, kw, kb = jax.random.split(key, 3)
        ws.append(jax.random.uniform(kw, (model_dim, model_dim), dtype,
                                     minval=-bound, maxval=bound))
        bs.append(jax.random.uniform(kb, (model_dim,), dtype,
                                     minval=-bound, maxval=bound))
    return jnp.stack(ws, axis=0), jnp.stack(bs, axis=0)


def prepare_params(weights_oi, biases, *, param_dtype=None):
    """One-time param prep (hoisted out of the per-call wrapper): transpose to
    (in, out), cast to the storage/MXU dtype, zero-pad model_dim to a multiple
    of 128 so the wrapper never pads weights per call."""
    L, D, _ = weights_oi.shape
    if param_dtype is None:
        param_dtype = weights_oi.dtype
    Dp = _round_up(D, 128)
    w = jnp.transpose(weights_oi, (0, 2, 1)).astype(param_dtype)  # (L, in, out)
    b = biases.astype(param_dtype)
    if Dp != D:
        w = jnp.pad(w, ((0, 0), (0, Dp - D), (0, Dp - D)))
        b = jnp.pad(b, ((0, 0), (0, Dp - D)))
    return w, b


def reference(seqs, w_prepared, b_prepared):
    """Pure-JAX reference mirroring the kernel's mixed-precision math:
    per-layer LHS cast to the weight dtype, f32 accumulation, f32 epilogue."""
    B, S, D = seqs.shape
    Dp = w_prepared.shape[-1]
    wd = w_prepared.dtype
    h = seqs.reshape(-1, D).astype(jnp.float32)
    if Dp != D:
        h = jnp.pad(h, ((0, 0), (0, Dp - D)))
    for l in range(w_prepared.shape[0]):
        lhs = h.astype(wd) if h.dtype != wd else h
        acc = jnp.dot(lhs, w_prepared[l], preferred_element_type=jnp.float32)
        h = jnp.maximum(acc + b_prepared[l].astype(jnp.float32), 0.0)
    return h[:, :D].reshape(B, S, D).astype(seqs.dtype)


if __name__ == "__main__":
    batch, seq, model_dim, num_layers = 2, 8, 32, 2

    key = jax.random.PRNGKey(0)
    key, k_x, k_p = jax.random.split(key, 3)
    seqs = jax.random.normal(k_x, (batch, seq, model_dim), jnp.float32)
    w_oi, b = init_params(k_p, model_dim, num_layers, jnp.float32)

    # 1) f32 params, resident-weights path (matches nn.Linear default dtype).
    wp32, bp32 = prepare_params(w_oi, b, param_dtype=jnp.float32)
    out = jax.block_until_ready(energy_projection(seqs, wp32, bp32))
    ref = reference(seqs, wp32, bp32)
    assert out.shape == (batch, seq, model_dim)
    assert jnp.allclose(out, ref, atol=1e-5, rtol=1e-5), "f32 resident mismatch"

    # 2) bf16 params (native MXU dtype), resident path; compare against a
    #    matching mixed-precision reference with bf16-appropriate tolerance.
    wpbf, bpbf = prepare_params(w_oi, b, param_dtype=jnp.bfloat16)
    out_bf = jax.block_until_ready(energy_projection(seqs, wpbf, bpbf))
    ref_bf = reference(seqs, wpbf, bpbf)
    assert jnp.allclose(out_bf, ref_bf, atol=2e-2, rtol=2e-2), "bf16 resident mismatch"

    # 3) bf16 params, layer-streamed weights path (large D*L / v7x fallback).
    out_st = jax.block_until_ready(
        energy_projection(seqs, wpbf, bpbf, force_stream=True))
    assert jnp.allclose(out_st, ref_bf, atol=2e-2, rtol=2e-2), "bf16 streaming mismatch"

    print("KERNEL_OK")
</pallas_src>

<mosaic_0001>
module attributes {stable_mosaic.version = 11 : i64} {
  func.func @_resident_kernel(%arg0: i32, %arg1: memref<16x128xf32, #tpu.memory_space<vmem>>, %arg2: memref<2x128x128xf32, #tpu.memory_space<vmem>>, %arg3: memref<2x128xf32, #tpu.memory_space<vmem>>, %arg4: memref<16x128xf32, #tpu.memory_space<vmem>>, %arg5: memref<16x128xf32, #tpu.memory_space<vmem>>) attributes {dimension_semantics = [#tpu.dimension_semantics<parallel>], iteration_bounds = array<i64: 1>, scalar_prefetch = 0 : i64, scratch_operands = 1 : i64, tpu.core_type = #tpu.core_type<tc>, window_params = [{transform_indices = @transform_0, window_bounds = array<i64: 16, 128>}, {pipeline_mode = #tpu.pipeline_mode<synchronous>, transform_indices = @transform_1, window_bounds = array<i64: 2, 128, 128>}, {pipeline_mode = #tpu.pipeline_mode<synchronous>, transform_indices = @transform_2, window_bounds = array<i64: 2, 128>}, {transform_indices = @transform_3, window_bounds = array<i64: 16, 128>}]} {
    %c0 = arith.constant 0 : index
    %c0_0 = arith.constant 0 : index
    %0 = vector.load %arg1[%c0, %c0_0] : memref<16x128xf32, #tpu.memory_space<vmem>>, vector<16x128xf32>
    %c0_1 = arith.constant 0 : index
    %c0_2 = arith.constant 0 : index
    %c0_3 = arith.constant 0 : index
    %1 = vector.load %arg2[%c0_1, %c0_2, %c0_3] : memref<2x128x128xf32, #tpu.memory_space<vmem>>, vector<1x128x128xf32>
    %2 = vector.shape_cast %1 : vector<1x128x128xf32> to vector<128x128xf32>
    %cst = arith.constant dense<0.000000e+00> : vector<16x128xf32>
    %3 = tpu.matmul %0, %2, %cst {dimension_numbers = #tpu.dot_dimension_numbers<[1], [0], [0], [1], [0, 0, 1, 1], [], []>} : vector<16x128xf32>, vector<128x128xf32>, vector<16x128xf32> -> vector<16x128xf32>
    %c0_4 = arith.constant 0 : index
    %c0_5 = arith.constant 0 : index
    %4 = vector.load %arg3[%c0_4, %c0_5] : memref<2x128xf32, #tpu.memory_space<vmem>>, vector<1x128xf32>
    %5 = vector.shape_cast %4 : vector<1x128xf32> to vector<128xf32>
    %6 = vector.shape_cast %5 : vector<128xf32> to vector<1x128xf32>
    %7 = vector.broadcast %6 : vector<1x128xf32> to vector<16x128xf32>
    %8 = arith.addf %3, %7 : vector<16x128xf32>
    %cst_6 = arith.constant 0.000000e+00 : f32
    %9 = vector.broadcast %cst_6 : f32 to vector<16x128xf32>
    %10 = arith.maximumf %8, %9 : vector<16x128xf32>
    %c0_7 = arith.constant 0 : index
    %c0_8 = arith.constant 0 : index
    %11 = vector.load %arg5[%c0_7, %c0_8] : memref<16x128xf32, #tpu.memory_space<vmem>>, vector<16x128xf32>
    tpu.vector_store %arg5[%c0_7, %c0_8], %10 {strides = array<i32>} : memref<16x128xf32, #tpu.memory_space<vmem>>, vector<16x128xf32>,
    %c0_9 = arith.constant 0 : index
    %c0_10 = arith.constant 0 : index
    %12 = vector.load %arg5[%c0_9, %c0_10] : memref<16x128xf32, #tpu.memory_space<vmem>>, vector<16x128xf32>
    %c1 = arith.constant 1 : index
    %c0_11 = arith.constant 0 : index
    %c0_12 = arith.constant 0 : index
    %13 = vector.load %arg2[%c1, %c0_11, %c0_12] : memref<2x128x128xf32, #tpu.memory_space<vmem>>, vector<1x128x128xf32>
    %14 = vector.shape_cast %13 : vector<1x128x128xf32> to vector<128x128xf32>
    %cst_13 = arith.constant dense<0.000000e+00> : vector<16x128xf32>
    %15 = tpu.matmul %12, %14, %cst_13 {dimension_numbers = #tpu.dot_dimension_numbers<[1], [0], [0], [1], [0, 0, 1, 1], [], []>} : vector<16x128xf32>, vector<128x128xf32>, vector<16x128xf32> -> vector<16x128xf32>
    %c1_14 = arith.constant 1 : index
    %c0_15 = arith.constant 0 : index
    %16 = vector.load %arg3[%c1_14, %c0_15] : memref<2x128xf32, #tpu.memory_space<vmem>>, vector<1x128xf32>
    %17 = vector.shape_cast %16 : vector<1x128xf32> to vector<128xf32>
    %18 = vector.shape_cast %17 : vector<128xf32> to vector<1x128xf32>
    %19 = vector.broadcast %18 : vector<1x128xf32> to vector<16x128xf32>
    %20 = arith.addf %15, %19 : vector<16x128xf32>
    %cst_16 = arith.constant 0.000000e+00 : f32
    %21 = vector.broadcast %cst_16 : f32 to vector<16x128xf32>
    %22 = arith.maximumf %20, %21 : vector<16x128xf32>
    %c0_17 = arith.constant 0 : index
    %c0_18 = arith.constant 0 : index
    %23 = vector.load %arg4[%c0_17, %c0_18] : memref<16x128xf32, #tpu.memory_space<vmem>>, vector<16x128xf32>
    tpu.vector_store %arg4[%c0_17, %c0_18], %22 {strides = array<i32>} : memref<16x128xf32, #tpu.memory_space<vmem>>, vector<16x128xf32>,
    return
  }
  func.func @transform_0(%arg0: i32) -> (i32, i32) {
    %c0_i32 = arith.constant 0 : i32
    %c0_i32_0 = arith.constant 0 : i32
    return %arg0, %c0_i32 : i32, i32
  }
  func.func @transform_1(%arg0: i32) -> (i32, i32, i32) {
    %c0_i32 = arith.constant 0 : i32
    %c0_i32_0 = arith.constant 0 : i32
    %c0_i32_1 = arith.constant 0 : i32
    %c0_i32_2 = arith.constant 0 : i32
    return %c0_i32, %c0_i32_0, %c0_i32_1 : i32, i32, i32
  }
  func.func @transform_2(%arg0: i32) -> (i32, i32) {
    %c0_i32 = arith.constant 0 : i32
    %c0_i32_0 = arith.constant 0 : i32
    %c0_i32_1 = arith.constant 0 : i32
    return %c0_i32, %c0_i32_0 : i32, i32
  }
  func.func @transform_3(%arg0: i32) -> (i32, i32) {
    %c0_i32 = arith.constant 0 : i32
    %c0_i32_0 = arith.constant 0 : i32
    return %arg0, %c0_i32 : i32, i32
  }
}

</mosaic_0001>

<bundles_post_ra>
// kernel: tpu_custom_call.1
= control target key start
LH: loop header
LB: loop body
LE: loop exit
PB: predicated region body
PF: predicated region fallthrough
CT: control target
= control target key end

     0   :  { %8 = vsyncpa [#allocation4], 0  ;;  %s591_s0 = inlined_call_operand.hbm [shape: f32[16,128], index: 0, kind: input, shape index: {}]   ;;  %s592_s1 = inlined_call_operand.hbm [shape: f32[2,128,128], index: 1, kind: input, shape index: {}]   ;;  %s593_s2 = inlined_call_operand.vmem [shape: f32[2,128], index: 2, kind: input, shape index: {}]   ;;  %s594_s3 = inlined_call_operand.hbm [shape: f32[16,128], index: 3, kind: output, shape index: {}]  }
   0x1   :  { %9 = vsyncpa [#allocation7], 0 }
   0x2   :  { %10 = vsyncpa [#allocation5], 0  ;;  %s515_s12 = smov [#allocation3]   ;;  %s443_s16 = scalar_lea.hbm %s591_s0, 256 }
   0x3   :  { %s16_s13 = sshll.u32 %s515_s12, 4  ;;  %p444_p0 = scmp.ne.s32.totalorder %s591_s0, %s443_s16  ;;  %s17_s13 = int_to_ptr.vmem [resolvable:$true] %s16_s13 }
   0x4   :  { %p447_p1 = scmp.lt.u32.totalorder %s443_s16, %s591_s0 }
   0x6   :  { %p449_p2 = pnand %p447_p1, %p444_p0 }
   0x8   :  { %452 = shalt.err (!%p449_p2)
}
   0x9   :  { %s453_s21 = scalar_lea.vmem %s17_s13, 256  ;;  %p458_p4 = scmp.lt.s32.totalorder %s17_s13, %s17_s13 }
   0xa   :  { %p454_p3 = scmp.ne.s32.totalorder %s17_s13, %s453_s21  ;;  %p459_p5 = scmp.lt.s32.totalorder %s453_s21, %s453_s21 }
   0xc   :  { %p460_p6 = por %p459_p5, %p458_p4 }
   0xe   :  { %p461_p7 = pnand %p460_p6, %p454_p3 }
  0x10   :  { %464 = shalt.err (!%p461_p7)
}
  0x11   :  { %s516_s22 = smov 128   ;;  %s517_s23 = smov 8  }
  0x12   :  { %22 = dma.hbm_to_vmem [thread:$0]  %s591_s0, 256, %s17_s13, [#allocation4], %s516_s22, %s516_s22, %s517_s23  }
  0x13   :  { %s518_s26 = smov [#allocation6]   ;;  %s465_s30 = scalar_lea.hbm %s592_s1, 4096 }
  0x14   :  { %s28_s27 = sshll.u32 %s518_s26, 4  ;;  %p466_p8 = scmp.ne.s32.totalorder %s592_s1, %s465_s30  ;;  %s29_s27 = int_to_ptr.vmem [resolvable:$true] %s28_s27 }
  0x15   :  { %p469_p9 = scmp.lt.u32.totalorder %s465_s30, %s592_s1 }
  0x17   :  { %p471_p10 = pnand %p469_p9, %p466_p8 }
  0x19   :  { %474 = shalt.err (!%p471_p10)
}
  0x1a   :  { %s475_s8 = scalar_lea.vmem %s29_s27, 4096  ;;  %p480_p12 = scmp.lt.s32.totalorder %s29_s27, %s29_s27 }
  0x1b   :  { %p476_p11 = scmp.ne.s32.totalorder %s29_s27, %s475_s8  ;;  %p481_p13 = scmp.lt.s32.totalorder %s475_s8, %s475_s8 }
  0x1d   :  { %p482_p0 = por %p481_p13, %p480_p12 }
  0x1f   :  { %p483_p1 = pnand %p482_p0, %p476_p11 }
  0x21   :  { %486 = shalt.err (!%p483_p1)
}
  0x22   :  { %34 = dma.hbm_to_vmem [thread:$0]  %s592_s1, 4096, %s29_s27, [#allocation7], %s516_s22, %s516_s22, %s517_s23  }
  0x23   :  { %509 = dma.done.wait [#allocation4], 256  }
  0x24   :  { %510 = vsyncadd [#allocation4], 4294967040 }
  0x25   :  { %511 = dma.done.wait [#allocation7], 4096  }
  0x26   :  { %512 = vsyncadd [#allocation7], 4294963200  ;;  %v45_v0 = vld [vmem:[#allocation6] sm:$0xff]  ;;  %v46_v1 = vld [vmem:[#allocation6 + $0x8] sm:$0xff]  ;;  %s519_s13 = smov [#allocation8]  }
  0x27   :  { %v47_v2 = vld [vmem:[#allocation6 + $0x10] sm:$0xff]  ;;  %v374_v3 = vpack.c.bf16 %v46_v1, %v45_v0  ;;  %v48_v4 = vld [vmem:[#allocation6 + $0x18] sm:$0xff]  ;;  %v49_v6 = vld [vmem:[#allocation6 + $0x20] sm:$0xff]  ;;  %s253_s14 = sshll.u32 %s519_s13, 4  ;;  %s254_s14 = int_to_ptr.vmem [resolvable:$true] %s253_s14 }
  0x28   :  { %v378_v5 = vpack.c.bf16 %v48_v4, %v47_v2  ;;  %v50_v7 = vld [vmem:[#allocation6 + $0x28] sm:$0xff]  ;;  %v51_v9 = vld [vmem:[#allocation6 + $0x30] sm:$0xff]  ;;  %v52_v10 = vld [vmem:[#allocation6 + $0x38] sm:$0xff]  ;;  %s487_s15 = scalar_lea.vmem %s254_s14, 256  ;;  %p492_p3 = scmp.lt.s32.totalorder %s254_s14, %s254_s14 }
  0x29   :  { %375 = vmatprep.subr.bf16.mxu0 %v374_v3  ;;  %v382_v8 = vpack.c.bf16 %v50_v7, %v49_v6  ;;  %v43_v11 = vld [vmem:[#allocation3] sm:$0xff]  ;;  %v148_v12 = vld [vmem:[#allocation6 + $0x80] sm:$0xff]  ;;  %v149_v13 = vld [vmem:[#allocation6 + $0x88] sm:$0xff]  ;;  %v386_v20 = vpack.c.bf16 %v52_v10, %v51_v9  ;;  %p488_p2 = scmp.ne.s32.totalorder %s254_s14, %s487_s15  ;;  %p493_p4 = scmp.lt.s32.totalorder %s487_s15, %s487_s15 }
  0x2a   :  { %377 = vmatpush3.bf16.msra.mxu0 %v374_v3  ;;  %336 = vmatprep.mubr.f32.mxu0 %v43_v11  ;;  %v150_v14 = vld [vmem:[#allocation6 + $0x90] sm:$0xff]  ;;  %v406_v15 = vpack.c.bf16 %v149_v13, %v148_v12  ;;  %v151_v16 = vld [vmem:[#allocation6 + $0x98] sm:$0xff]  ;;  %v152_v18 = vld [vmem:[#allocation6 + $0xa0] sm:$0xff] }
  0x2b   :  { %379 = vmatprep.subr.bf16.mxu0 %v378_v5  ;;  %v410_v17 = vpack.c.bf16 %v151_v16, %v150_v14  ;;  %v153_v19 = vld [vmem:[#allocation6 + $0xa8] sm:$0xff]  ;;  %v53_v21 = vld [vmem:[#allocation6 + $0x40] sm:$0xff]  ;;  %v154_v24 = vld [vmem:[#allocation6 + $0xb0] sm:$0xff]  ;;  %p494_p5 = por %p493_p4, %p492_p3 }
  0x2c   :  { %407 = vmatprep.subr.bf16.mxu1 %v406_v15  ;;  %v54_v22 = vld [vmem:[#allocation6 + $0x48] sm:$0xff]  ;;  %v414_v23 = vpack.c.bf16 %v153_v19, %v152_v18  ;;  %v155_v25 = vld [vmem:[#allocation6 + $0xb8] sm:$0xff]  ;;  %v55_v27 = vld [vmem:[#allocation6 + $0x50] sm:$0xff] }
  0x2d   :  { %409 = vmatpush3.bf16.msra.mxu1 %v406_v15  ;;  %v390_v26 = vpack.c.bf16 %v54_v22, %v53_v21  ;;  %v56_v28 = vld [vmem:[#allocation6 + $0x58] sm:$0xff]  ;;  %v418_v29 = vpack.c.bf16 %v155_v25, %v154_v24  ;;  %v156_v30 = vld [vmem:[#allocation6 + $0xc0] sm:$0xff]  ;;  %v157_v31 = vld [vmem:[#allocation6 + $0xc8] sm:$0xff]  ;;  %p495_p6 = pnand %p494_p5, %p488_p2 }
  0x2e   :  { %381 = vmatpush3.bf16.msra.mxu0 %v378_v5  ;;  %411 = vmatprep.subr.bf16.mxu1 %v410_v17  ;;  %v394_v32 = vpack.c.bf16 %v56_v28, %v55_v27  ;;  %v57_v33 = vld [vmem:[#allocation6 + $0x60] sm:$0xff]  ;;  %v58_v34 = vld [vmem:[#allocation6 + $0x68] sm:$0xff]  ;;  %v422_v35 = vpack.c.bf16 %v157_v31, %v156_v30  ;;  %v158_v36 = vld [vmem:[#allocation6 + $0xd0] sm:$0xff] }
  0x2f   :  { %383 = vmatprep.subr.bf16.mxu0 %v382_v8  ;;  %v159_v37 = vld [vmem:[#allocation6 + $0xd8] sm:$0xff]  ;;  %v398_v38 = vpack.c.bf16 %v58_v34, %v57_v33  ;;  %v59_v39 = vld [vmem:[#allocation6 + $0x70] sm:$0xff]  ;;  %v160_v42 = vld [vmem:[#allocation6 + $0xe0] sm:$0xff] }
  0x30   :  { %v60_v40 = vld [vmem:[#allocation6 + $0x78] sm:$0xff]  ;;  %v426_v41 = vpack.c.bf16 %v159_v37, %v158_v36  ;;  %v161_v43 = vld [vmem:[#allocation6 + $0xe8] sm:$0xff]  ;;  %v162_v47 = vld [vmem:[#allocation6 + $0xf0] sm:$0xff] }
  0x31   :  { %413 = vmatpush3.bf16.msra.mxu1 %v410_v17  ;;  %v402_v44 = vpack.c.bf16 %v60_v40, %v59_v39  ;;  %v430_v45 = vpack.c.bf16 %v161_v43, %v160_v42  ;;  %v44_v46 = vld [vmem:[#allocation3 + $0x8] sm:$0xff]  ;;  %v266_v50 = vld [vmem:[%s593_s2] ss:$0 sm:$0xff]  ;;  %v267_v57 = vld [vmem:[%s593_s2 + $0x1] ss:$0 sm:$0xff] }
  0x32   :  { %385 = vmatpush3.bf16.msra.mxu0 %v382_v8  ;;  %415 = vmatprep.subr.bf16.mxu1 %v414_v23  ;;  %v163_v48 = vld [vmem:[#allocation6 + $0xf8] sm:$0xff] }
  0x33   :  { %387 = vmatprep.subr.bf16.mxu0 %v386_v20  ;;  %v434_v49 = vpack.c.bf16 %v163_v48, %v162_v47 }
  0x35   :  { %417 = vmatpush3.bf16.msra.mxu1 %v414_v23 }
  0x36   :  { %389 = vmatpush3.bf16.msra.mxu0 %v386_v20  ;;  %419 = vmatprep.subr.bf16.mxu1 %v418_v29 }
  0x37   :  { %391 = vmatprep.subr.bf16.mxu0 %v390_v26 }
  0x39   :  { %421 = vmatpush3.bf16.msra.mxu1 %v418_v29 }
  0x3a   :  { %393 = vmatpush3.bf16.msra.mxu0 %v390_v26  ;;  %423 = vmatprep.subr.bf16.mxu1 %v422_v35 }
  0x3b   :  { %395 = vmatprep.subr.bf16.mxu0 %v394_v32 }
  0x3d   :  { %425 = vmatpush3.bf16.msra.mxu1 %v422_v35 }
  0x3e   :  { %397 = vmatpush3.bf16.msra.mxu0 %v394_v32  ;;  %427 = vmatprep.subr.bf16.mxu1 %v426_v41 }
  0x3f   :  { %399 = vmatprep.subr.bf16.mxu0 %v398_v38 }
  0x41   :  { %429 = vmatpush3.bf16.msra.mxu1 %v426_v41 }
  0x42   :  { %401 = vmatpush3.bf16.msra.mxu0 %v398_v38  ;;  %431 = vmatprep.subr.bf16.mxu1 %v430_v45 }
  0x43   :  { %403 = vmatprep.subr.bf16.mxu0 %v402_v44 }
  0x45   :  { %433 = vmatpush3.bf16.msra.mxu1 %v430_v45 }
  0x46   :  { %405 = vmatpush3.bf16.msra.mxu0 %v402_v44  ;;  %435 = vmatprep.subr.bf16.mxu1 %v434_v49 }
  0x49   :  { %337 = vmatmul.mubr.f32.vlgmr.msra.gmra.mrb[0].mxu0 %v44_v46  ;;  %437 = vmatpush3.bf16.msra.mxu1 %v434_v49 }
 0x11c   :  { %v338_v51 = vpop.f32.mrb[0].mxu0 }
 0x11d   :  { %v138_v52 = vadd.f32 %v338_v51, %v266_v50  ;;  %v132_v53 = vpop.f32.mrb[1].mxu0 }
 0x11e   :  { %v133_v54 = vadd.f32 %v266_v50, %v132_v53 }
 0x11f   :  { %v142_v56 = vmax.f32 %v138_v52, 0.0 }
 0x120   :  { %v141_v55 = vmax.f32 %v133_v54, 0.0 }
 0x122   :  { %371 = vmatprep.mubr.f32.mxu1 %v141_v55 }
 0x123   :  { %372 = vmatmul.mubr.f32.vlgmr.msra.gmra.mrb[0].mxu1 %v142_v56 }
 0x1f6   :  { %v373_v58 = vpop.f32.mrb[0].mxu1 }
 0x1f7   :  { %v241_v59 = vadd.f32 %v373_v58, %v267_v57  ;;  %v235_v60 = vpop.f32.mrb[1].mxu1 }
 0x1f8   :  { %v236_v61 = vadd.f32 %v267_v57, %v235_v60 }
 0x1f9   :  { %v245_v62 = vmax.f32 %v241_v59, 0.0 }
 0x1fa   :  { %v244_v63 = vmax.f32 %v236_v61, 0.0 }
 0x1fb   :  { %247 = vst [vmem:[#allocation8 + $0x8] sm:$0xff] %v245_v62 }
 0x1fc   :  { %246 = vst [vmem:[#allocation8] sm:$0xff] %v244_v63 }
 0x1fd   :  { %498 = shalt.err (!%p495_p6)
}
 0x1fe   :  { %s499_s17 = scalar_lea.hbm %s594_s3, 256 }
 0x1ff   :  { %p500_p7 = scmp.ne.s32.totalorder %s594_s3, %s499_s17  ;;  %p503_p8 = scmp.lt.u32.totalorder %s499_s17, %s594_s3 }
 0x201   :  { %p505_p9 = pnand %p503_p8, %p500_p7 }
 0x203   :  { %508 = shalt.err (!%p505_p9)
}
 0x204   :  { %259 = dma.vmem_to_hbm [thread:$0]  %s254_s14, 256, %s594_s3, [#allocation5], %s516_s22, %s516_s22, %s517_s23  }
 0x205   :  { %513 = dma.done.wait [#allocation5], 256  }
 0x206   :  { %514 = vsyncadd [#allocation5], 4294967040 }
 0x207   :  { %263 = vsyncpa [#allocation4], 1 }
 0x208   :  { %264 = vsyncpa [#allocation7], 1 }
 0x209   :  { %265 = vsyncpa [#allocation5], 1 }

</bundles_post_ra>
